<compile_context>
chip_gen: v5e
topology: v5e:2x2
jax: 0.10.0
libtpu: 0.0.40
codegen_flags: <defaults>
</compile_context>

<pallas_src>
import jax
import jax.numpy as jnp
from jax.experimental import pallas as pl
from jax.experimental.pallas import tpu as pltpu


def _fused_kernel(x75_ref, x69_ref, w1_ref, bias_ref, w2_ref, out_ref):
    # x75_ref : (C, M) bf16   activations, channels-major (1x1 conv == W @ X)
    # x69_ref : (C, M) bf16   residual input
    # w1_ref  : (C, C) bf16   conv1 weight with BN scale folded in (C_out, C_in)
    # bias_ref: (C, 1) f32    folded BN bias
    # w2_ref  : (C, C) bf16   conv2 weight (C_out, C_in)
    # out_ref : (C, M) f32
    y = jnp.dot(w1_ref[...], x75_ref[...], preferred_element_type=jnp.float32)
    y = y + bias_ref[...]                                     # folded BN bias
    y = jnp.maximum(x69_ref[...].astype(jnp.float32) + y, 0.0)  # residual + ReLU (f32)
    out_ref[...] = jnp.dot(
        w2_ref[...], y.astype(w2_ref.dtype), preferred_element_type=jnp.float32
    ).astype(out_ref.dtype)


def prepare_params(w1, gamma, beta, running_mean, running_var, w2, eps=1e-5):
    """One-time weight prep: fold BN into conv1 and cast weights to bf16."""
    c = w1.shape[0]
    inv_std = 1.0 / jnp.sqrt(running_var + eps)
    scale = gamma * inv_std                                         # (C,)
    bias = (beta - running_mean * scale).reshape(c, 1).astype(jnp.float32)
    w1_mat = (w1[:, :, 0, 0] * scale[:, None]).astype(jnp.bfloat16)  # (C_out, C_in)
    w2_mat = w2[:, :, 0, 0].astype(jnp.bfloat16)                     # (C_out, C_in)
    return w1_mat, bias, w2_mat


@jax.jit
def fused_block(x75, x69, w1_mat, bias, w2_mat):
    """x75, x69: NCHW float32. Weights from prepare_params()."""
    n, c, h, w = x75.shape
    m = n * h * w

    def to_cm(x):
        if n == 1:
            return x.reshape(c, m)  # N=1: NCHW -> (C, H*W) is a free reshape
        return jnp.transpose(x, (1, 0, 2, 3)).reshape(c, m)

    x75_cm = to_cm(x75).astype(jnp.bfloat16)
    x69_cm = to_cm(x69).astype(jnp.bfloat16)  # bf16 residual: half the DMA bytes

    cost = pl.CostEstimate(
        flops=2 * 2 * c * c * m + 3 * c * m,
        transcendentals=0,
        bytes_accessed=(
            x75_cm.size * 2 + x69_cm.size * 2 + w1_mat.size * 2
            + w2_mat.size * 2 + bias.size * 4 + c * m * 4
        ),
    )

    out_cm = pl.pallas_call(
        _fused_kernel,
        out_shape=jax.ShapeDtypeStruct((c, m), jnp.float32),
        grid=(1,),  # single step: per-step overhead >> total MXU time here
        in_specs=[
            pl.BlockSpec((c, m), lambda i: (0, 0)),  # x75 (full extent)
            pl.BlockSpec((c, m), lambda i: (0, 0)),  # x69 (full extent)
            pl.BlockSpec((c, c), lambda i: (0, 0)),  # w1  (resident)
            pl.BlockSpec((c, 1), lambda i: (0, 0)),  # bias (resident)
            pl.BlockSpec((c, c), lambda i: (0, 0)),  # w2  (resident)
        ],
        out_specs=pl.BlockSpec((c, m), lambda i: (0, 0)),
        compiler_params=pltpu.CompilerParams(dimension_semantics=("arbitrary",)),
        cost_estimate=cost,
    )(x75_cm, x69_cm, w1_mat, bias, w2_mat)

    if n == 1:
        return out_cm.reshape(n, c, h, w)
    return jnp.transpose(out_cm.reshape(c, n, h, w), (1, 0, 2, 3))


def _reference_f32(x75, x69, w1, gamma, beta, running_mean, running_var, w2, eps=1e-5):
    # Pure f32 NCHW reference of the PyTorch module (inference-mode BN).
    n, c, h, w = x75.shape
    x75_cm = x75.reshape(n, c, h * w)
    x69_cm = x69.reshape(n, c, h * w)
    w1_mat = w1[:, :, 0, 0]
    w2_mat = w2[:, :, 0, 0]
    y = jnp.einsum("oc,ncm->nom", w1_mat, x75_cm)
    y = (y - running_mean[None, :, None]) / jnp.sqrt(running_var + eps)[None, :, None]
    y = y * gamma[None, :, None] + beta[None, :, None]
    y = jnp.maximum(x69_cm + y, 0.0)
    out = jnp.einsum("oc,ncm->nom", w2_mat, y)
    return out.reshape(n, c, h, w)


if __name__ == "__main__":
    key = jax.random.PRNGKey(0)
    k_x75, k_x69, k_w1, k_w2, k_mean, k_var = jax.random.split(key, 6)

    N, C, H, W = 1, 160, 14, 14
    x75 = jax.random.normal(k_x75, (N, C, H, W), dtype=jnp.float32)
    x69 = jax.random.normal(k_x69, (N, C, H, W), dtype=jnp.float32)

    # Conv weights (C_out, C_in, 1, 1), no bias
    w1 = jax.random.normal(k_w1, (C, C, 1, 1), dtype=jnp.float32) * 0.05
    w2 = jax.random.normal(k_w2, (C, C, 1, 1), dtype=jnp.float32) * 0.05

    # BatchNorm parameters (affine=True, track_running_stats=True)
    gamma = jnp.ones((C,), dtype=jnp.float32)
    beta = jnp.zeros((C,), dtype=jnp.float32)
    running_mean = jax.random.normal(k_mean, (C,), dtype=jnp.float32) * 0.1
    running_var = jnp.abs(jax.random.normal(k_var, (C,), dtype=jnp.float32)) + 0.5

    # One-time weight prep (hoisted out of the per-call path).
    w1_mat, bias, w2_mat = prepare_params(w1, gamma, beta, running_mean, running_var, w2)

    out = fused_block(x75, x69, w1_mat, bias, w2_mat)
    out = jax.block_until_ready(out)

    ref = _reference_f32(x75, x69, w1, gamma, beta, running_mean, running_var, w2)
    assert out.shape == (N, C, H, W)
    # bf16 MXU inputs / bf16 residual with f32 accumulation -> relaxed tolerance.
    assert jnp.allclose(out, ref, atol=5e-2, rtol=5e-2), "mismatch vs reference"

    print("KERNEL_OK")
</pallas_src>

<mosaic_0001>
module attributes {stable_mosaic.version = 11 : i64} {
  func.func @_fused_kernel(%arg0: i32, %arg1: memref<160x196xbf16, #tpu.memory_space<vmem>>, %arg2: memref<160x196xbf16, #tpu.memory_space<vmem>>, %arg3: memref<160x160xbf16, #tpu.memory_space<vmem>>, %arg4: memref<160x1xf32, #tpu.memory_space<vmem>>, %arg5: memref<160x160xbf16, #tpu.memory_space<vmem>>, %arg6: memref<160x196xf32, #tpu.memory_space<vmem>>) attributes {dimension_semantics = [#tpu.dimension_semantics<arbitrary>], iteration_bounds = array<i64: 1>, scalar_prefetch = 0 : i64, scratch_operands = 0 : i64, tpu.core_type = #tpu.core_type<tc>, window_params = [{pipeline_mode = #tpu.pipeline_mode<synchronous>, transform_indices = @transform_0, window_bounds = array<i64: 160, 196>}, {pipeline_mode = #tpu.pipeline_mode<synchronous>, transform_indices = @transform_1, window_bounds = array<i64: 160, 196>}, {pipeline_mode = #tpu.pipeline_mode<synchronous>, transform_indices = @transform_2, window_bounds = array<i64: 160, 160>}, {pipeline_mode = #tpu.pipeline_mode<synchronous>, transform_indices = @transform_3, window_bounds = array<i64: 160, 1>}, {pipeline_mode = #tpu.pipeline_mode<synchronous>, transform_indices = @transform_4, window_bounds = array<i64: 160, 160>}, {pipeline_mode = #tpu.pipeline_mode<synchronous>, transform_indices = @transform_5, window_bounds = array<i64: 160, 196>}]} {
    %c0 = arith.constant 0 : index
    %c0_0 = arith.constant 0 : index
    %0 = vector.load %arg3[%c0, %c0_0] : memref<160x160xbf16, #tpu.memory_space<vmem>>, vector<160x160xbf16>
    %c0_1 = arith.constant 0 : index
    %c0_2 = arith.constant 0 : index
    %1 = vector.load %arg1[%c0_1, %c0_2] : memref<160x196xbf16, #tpu.memory_space<vmem>>, vector<160x196xbf16>
    %cst = arith.constant dense<0.000000e+00> : vector<160x196xf32>
    %2 = tpu.matmul %0, %1, %cst {dimension_numbers = #tpu.dot_dimension_numbers<[1], [0], [0], [1], [0, 0, 1, 1], [], []>} : vector<160x160xbf16>, vector<160x196xbf16>, vector<160x196xf32> -> vector<160x196xf32>
    %c0_3 = arith.constant 0 : index
    %c0_4 = arith.constant 0 : index
    %3 = vector.load %arg4[%c0_3, %c0_4] : memref<160x1xf32, #tpu.memory_space<vmem>>, vector<160x1xf32>
    %4 = vector.broadcast %3 : vector<160x1xf32> to vector<160x196xf32>
    %5 = arith.addf %2, %4 : vector<160x196xf32>
    %c0_5 = arith.constant 0 : index
    %c0_6 = arith.constant 0 : index
    %6 = vector.load %arg2[%c0_5, %c0_6] : memref<160x196xbf16, #tpu.memory_space<vmem>>, vector<160x196xbf16>
    %7 = arith.extf %6 : vector<160x196xbf16> to vector<160x196xf32>
    %8 = arith.addf %7, %5 : vector<160x196xf32>
    %cst_7 = arith.constant 0.000000e+00 : f32
    %9 = vector.broadcast %cst_7 : f32 to vector<160x196xf32>
    %10 = arith.maximumf %8, %9 : vector<160x196xf32>
    %c0_8 = arith.constant 0 : index
    %c0_9 = arith.constant 0 : index
    %11 = vector.load %arg5[%c0_8, %c0_9] : memref<160x160xbf16, #tpu.memory_space<vmem>>, vector<160x160xbf16>
    %12 = arith.truncf %10 : vector<160x196xf32> to vector<160x196xbf16>
    %cst_10 = arith.constant dense<0.000000e+00> : vector<160x196xf32>
    %13 = tpu.matmul %11, %12, %cst_10 {dimension_numbers = #tpu.dot_dimension_numbers<[1], [0], [0], [1], [0, 0, 1, 1], [], []>} : vector<160x160xbf16>, vector<160x196xbf16>, vector<160x196xf32> -> vector<160x196xf32>
    %c0_11 = arith.constant 0 : index
    %c0_12 = arith.constant 0 : index
    %14 = vector.load %arg6[%c0_11, %c0_12] : memref<160x196xf32, #tpu.memory_space<vmem>>, vector<160x196xf32>
    tpu.vector_store %arg6[%c0_11, %c0_12], %13 {strides = array<i32>} : memref<160x196xf32, #tpu.memory_space<vmem>>, vector<160x196xf32>,
    return
  }
  func.func @transform_0(%arg0: i32) -> (i32, i32) {
    %c0_i32 = arith.constant 0 : i32
    %c0_i32_0 = arith.constant 0 : i32
    %c0_i32_1 = arith.constant 0 : i32
    return %c0_i32, %c0_i32_0 : i32, i32
  }
  func.func @transform_1(%arg0: i32) -> (i32, i32) {
    %c0_i32 = arith.constant 0 : i32
    %c0_i32_0 = arith.constant 0 : i32
    %c0_i32_1 = arith.constant 0 : i32
    return %c0_i32, %c0_i32_0 : i32, i32
  }
  func.func @transform_2(%arg0: i32) -> (i32, i32) {
    %c0_i32 = arith.constant 0 : i32
    %c0_i32_0 = arith.constant 0 : i32
    %c0_i32_1 = arith.constant 0 : i32
    return %c0_i32, %c0_i32_0 : i32, i32
  }
  func.func @transform_3(%arg0: i32) -> (i32, i32) {
    %c0_i32 = arith.constant 0 : i32
    %c0_i32_0 = arith.constant 0 : i32
    %c0_i32_1 = arith.constant 0 : i32
    return %c0_i32, %c0_i32_0 : i32, i32
  }
  func.func @transform_4(%arg0: i32) -> (i32, i32) {
    %c0_i32 = arith.constant 0 : i32
    %c0_i32_0 = arith.constant 0 : i32
    %c0_i32_1 = arith.constant 0 : i32
    return %c0_i32, %c0_i32_0 : i32, i32
  }
  func.func @transform_5(%arg0: i32) -> (i32, i32) {
    %c0_i32 = arith.constant 0 : i32
    %c0_i32_0 = arith.constant 0 : i32
    %c0_i32_1 = arith.constant 0 : i32
    return %c0_i32, %c0_i32_0 : i32, i32
  }
}

</mosaic_0001>

<bundles_post_ra>
// kernel: fused_block.1
= control target key start
LH: loop header
LB: loop body
LE: loop exit
PB: predicated region body
PF: predicated region fallthrough
CT: control target
= control target key end

     0   :  { %v1563_v0 = vmov 0   ;;  %vm371_vm0 = vcmask 261120   ;;  %vm1175_vm1 = vcmask 556032   ;;  %s2587_s3 = inlined_call_operand.vmem [shape: f32[160,1], index: 3, kind: input, shape index: {}]   ;;  %s2588_s0 = inlined_call_operand.vmem [shape: bf16[160,196], index: 0, kind: input, shape index: {}]   ;;  %s2589_s2 = inlined_call_operand.vmem [shape: bf16[160,160], index: 2, kind: input, shape index: {}]   ;;  %s2590_s1 = inlined_call_operand.vmem [shape: bf16[160,196], index: 1, kind: input, shape index: {}]   ;;  %s2591_s4 = inlined_call_operand.vmem [shape: bf16[160,160], index: 4, kind: input, shape index: {}]   ;;  %s2592_s5 = inlined_call_operand.vmem [shape: f32[160,196], index: 5, kind: output, shape index: {}]  }
   0x1   :  { %1560 = vset.pattern.permute.xlu0 %v1563_v0  ;;  %v75_v1 = vld [vmem:[%s2587_s3 + $0x70] sm:$0xff]  ;;  %v1534_v3 = vld [vmem:[%s2588_s0 + $0x74] sm:$0xf0]  ;;  %1561 = vset.pattern.permute.xlu1 %v1563_v0  ;;  %v1359_v6 = vld [vmem:[%s2588_s0 + $0x78] sm:$0xf0] }
   0x2   :  { %v1357_v2 = vld [vmem:[%s2588_s0 + $0x70] sm:$0xf]  ;;  %153 = vperm.xlu0 %1560, %v75_v1   ;;  %v1533_v5 = vld [vmem:[%s2588_s0 + $0x74] sm:$0xf]  ;;  %v73_v7 = vld [vmem:[%s2587_s3 + $0x60] sm:$0xff]  ;;  %1562 = vset.pattern.permute.xlu2 %v1563_v0 }
   0x3   :  { %v1358_v4 = vor.u32 %v1534_v3, %v1357_v2  ;;  %v1362_v8 = vor.u32 %v1533_v5, %v1359_v6  ;;  %143 = vperm.xlu1 %1561, %v73_v7   ;;  %v1349_v9 = vld [vmem:[%s2588_s0 + $0x60] sm:$0xf]  ;;  %v1532_v10 = vld [vmem:[%s2588_s0 + $0x64] sm:$0xf0]  ;;  %v1531_v11 = vld [vmem:[%s2588_s0 + $0x64] sm:$0xf] }
   0x4   :  { %v1350_v12 = vor.u32 %v1532_v10, %v1349_v9  ;;  %v1351_v13 = vld [vmem:[%s2588_s0 + $0x68] sm:$0xf0]  ;;  %v1341_v15 = vld [vmem:[%s2588_s0 + $0x50] sm:$0xf]  ;;  %v1530_v16 = vld [vmem:[%s2588_s0 + $0x54] sm:$0xf0] }
   0x5   :  { %402 = vmatpush.bf16.msra.mxu0 %v1358_v4  ;;  %520 = vmatpush.bf16.msra.mxu2 %v1362_v8  ;;  %v1354_v14 = vor.u32 %v1531_v11, %v1351_v13  ;;  %v1529_v17 = vld [vmem:[%s2588_s0 + $0x54] sm:$0xf]  ;;  %v1343_v18 = vld [vmem:[%s2588_s0 + $0x58] sm:$0xf0]  ;;  %v1342_v20 = vor.u32 %v1530_v16, %v1341_v15  ;;  %v74_v21 = vld [vmem:[%s2587_s3 + $0x68] sm:$0xff] }
   0x6   :  { %v76_v19 = vld [vmem:[%s2587_s3 + $0x78] sm:$0xff]  ;;  %v1346_v22 = vor.u32 %v1529_v17, %v1343_v18  ;;  %v1333_v23 = vld [vmem:[%s2588_s0 + $0x40] sm:$0xf]  ;;  %v1528_v24 = vld [vmem:[%s2588_s0 + $0x44] sm:$0xf0] }
   0x7   :  { %v1537_v25 = vld [vmem:[%s2588_s0 + $0x94] sm:$0xf]  ;;  %v1527_v26 = vld [vmem:[%s2588_s0 + $0x44] sm:$0xf]  ;;  %v1335_v27 = vld [vmem:[%s2588_s0 + $0x48] sm:$0xf0]  ;;  %v1334_v31 = vor.u32 %v1528_v24, %v1333_v23 }
   0x8   :  { %v1375_v28 = vld [vmem:[%s2588_s0 + $0x98] sm:$0xf0]  ;;  %v1535_v30 = vld [vmem:[%s2588_s0 + $0x84] sm:$0xf]  ;;  %v1325_v32 = vld [vmem:[%s2588_s0 + $0x30] sm:$0xf]  ;;  %v1338_v34 = vor.u32 %v1527_v26, %v1335_v27 }
   0x9   :  { %403 = vmatpush.bf16.msra.mxu0 %v1350_v12  ;;  %521 = vmatpush.bf16.msra.mxu2 %v1354_v14  ;;  %v1378_v29 = vor.u32 %v1537_v25, %v1375_v28  ;;  %v1367_v33 = vld [vmem:[%s2588_s0 + $0x88] sm:$0xf0]  ;;  %v1526_v35 = vld [vmem:[%s2588_s0 + $0x34] sm:$0xf0]  ;;  %v1373_v37 = vld [vmem:[%s2588_s0 + $0x90] sm:$0xf] }
   0xa   :  { %158 = vperm.xlu0 %1560, %v76_v19   ;;  %v1370_v36 = vor.u32 %v1535_v30, %v1367_v33  ;;  %v1538_v38 = vld [vmem:[%s2588_s0 + $0x94] sm:$0xf0]  ;;  %v1525_v39 = vld [vmem:[%s2588_s0 + $0x34] sm:$0xf]  ;;  %v1327_v40 = vld [vmem:[%s2588_s0 + $0x38] sm:$0xf0]  ;;  %v1326_v45 = vor.u32 %v1526_v35, %v1325_v32 }
   0xb   :  { %148 = vperm.xlu1 %1561, %v74_v21   ;;  %585 = vmatpush.bf16.msra.mxu3 %v1378_v29  ;;  %v1374_v41 = vor.u32 %v1538_v38, %v1373_v37  ;;  %v1499_v42 = vld [vmem:[%s2589_s2 + $0x4] sm:$0xf]  ;;  %v1223_v44 = vld [vmem:[%s2589_s2 + $0x8] sm:$0xf0]  ;;  %v1365_v48 = vld [vmem:[%s2588_s0 + $0x80] sm:$0xf]  ;;  %v1330_v50 = vor.u32 %v1525_v39, %v1327_v40 }
   0xc   :  { %v69_v43 = vld [vmem:[%s2587_s3 + $0x40] sm:$0xff]  ;;  %v70_v46 = vld [vmem:[%s2587_s3 + $0x48] sm:$0xff]  ;;  %v1226_v47 = vor.u32 %v1499_v42, %v1223_v44  ;;  %v1309_v58 = vld [vmem:[%s2588_s0 + $0x10] sm:$0xf] }
   0xd   :  { %404 = vmatpush.bf16.msra.mxu0 %v1342_v20  ;;  %522 = vmatpush.bf16.msra.mxu2 %v1346_v22  ;;  %v1536_v49 = vld [vmem:[%s2588_s0 + $0x84] sm:$0xf0]  ;;  %v1317_v51 = vld [vmem:[%s2588_s0 + $0x20] sm:$0xf]  ;;  %v1523_v54 = vld [vmem:[%s2588_s0 + $0x24] sm:$0xf] }
   0xe   :  { %467 = vmatpush.bf16.msra.mxu1 %v1374_v41  ;;  %v1524_v52 = vld [vmem:[%s2588_s0 + $0x24] sm:$0xf0]  ;;  %v1366_v53 = vor.u32 %v1536_v49, %v1365_v48  ;;  %v1319_v55 = vld [vmem:[%s2588_s0 + $0x28] sm:$0xf0]  ;;  %v1522_v59 = vld [vmem:[%s2588_s0 + $0x14] sm:$0xf0] }
   0xf   :  { %586 = vmatpush.bf16.msra.mxu3 %v1370_v36  ;;  %v1318_v56 = vor.u32 %v1524_v52, %v1317_v51  ;;  %v1322_v57 = vor.u32 %v1523_v54, %v1319_v55  ;;  %v71_v60 = vld [vmem:[%s2587_s3 + $0x50] sm:$0xff]  ;;  %v1311_v62 = vld [vmem:[%s2588_s0 + $0x18] sm:$0xf0]  ;;  %v1310_v0 = vor.u32 %v1522_v59, %v1309_v58  ;;  %v1301_v3 = vld [vmem:[%s2588_s0] sm:$0xf] }
  0x10   :  { %v1521_v61 = vld [vmem:[%s2588_s0 + $0x14] sm:$0xf]  ;;  %133 = vperm.xlu2 %1562, %v71_v60   ;;  %v68_v63 = vld [vmem:[%s2587_s3 + $0x38] sm:$0xff]  ;;  %v1520_v4 = vld [vmem:[%s2588_s0 + $0x4] sm:$0xf0] }
  0x11   :  { %405 = vmatpush.bf16.msra.mxu0 %v1334_v31  ;;  %523 = vmatpush.bf16.msra.mxu2 %v1338_v34  ;;  %v79_v1 = vld [vmem:[%s2587_s3 + $0x90] sm:$0xff]  ;;  %v1314_v2 = vor.u32 %v1521_v61, %v1311_v62  ;;  %v1519_v5 = vld [vmem:[%s2588_s0 + $0x4] sm:$0xf]  ;;  %v1303_v6 = vld [vmem:[%s2588_s0 + $0x8] sm:$0xf0]  ;;  %v1302_v8 = vor.u32 %v1520_v4, %v1301_v3 }
  0x12   :  { %123 = vperm.xlu0 %1560, %v69_v43   ;;  %1389 = vmatmul.msk.bf16.vlgmr.msra.gmra.mxu3 %vm371_vm0, %v1226_v47  ;;  %v72_v7 = vld [vmem:[%s2587_s3 + $0x58] sm:$0xff]  ;;  %v1221_v9 = vld [vmem:[%s2589_s2] sm:$0xf]  ;;  %v1500_v10 = vld [vmem:[%s2589_s2 + $0x4] sm:$0xf0]  ;;  %v1306_v11 = vor.u32 %v1519_v5, %v1303_v6 }
  0x13   :  { %128 = vperm.xlu1 %1561, %v70_v46   ;;  %468 = vmatpush.bf16.msra.mxu1 %v1366_v53  ;;  %v1501_v12 = vld [vmem:[%s2589_s2 + $0x14] sm:$0xf]  ;;  %v1231_v13 = vld [vmem:[%s2589_s2 + $0x18] sm:$0xf0]  ;;  %v1222_v14 = vor.u32 %v1500_v10, %v1221_v9  ;;  %v65_v15 = vld [vmem:[%s2587_s3 + $0x20] sm:$0xff] }
  0x14   :  { %v66_v16 = vld [vmem:[%s2587_s3 + $0x28] sm:$0xff]  ;;  %v1234_v17 = vor.u32 %v1501_v12, %v1231_v13  ;;  %v67_v18 = vld [vmem:[%s2587_s3 + $0x30] sm:$0xff]  ;;  %v80_v21 = vld [vmem:[%s2587_s3 + $0x98] sm:$0xff] }
  0x15   :  { %406 = vmatpush.bf16.msra.mxu0 %v1326_v45  ;;  %524 = vmatpush.bf16.msra.mxu2 %v1330_v50  ;;  %v78_v19 = vld [vmem:[%s2587_s3 + $0x88] sm:$0xff]  ;;  %v63_v20 = vld [vmem:[%s2587_s3 + $0x10] sm:$0xff]  ;;  %v1502_v23 = vld [vmem:[%s2589_s2 + $0x14] sm:$0xf0] }
  0x16   :  { %1379 = vmatmul.msk.bf16.vlgmr.msra.gmra.mxu1 %vm371_vm0, %v1226_v47  ;;  %v1229_v22 = vld [vmem:[%s2589_s2 + $0x10] sm:$0xf]  ;;  %v1503_v24 = vld [vmem:[%s2589_s2 + $0x24] sm:$0xf]  ;;  %v1239_v25 = vld [vmem:[%s2589_s2 + $0x28] sm:$0xf0] }
  0x17   :  { %v1230_v26 = vor.u32 %v1502_v23, %v1229_v22  ;;  %v61_v27 = vld [vmem:[%s2587_s3] sm:$0xff]  ;;  %v62_v28 = vld [vmem:[%s2587_s3 + $0x8] sm:$0xff]  ;;  %v1242_v29 = vor.u32 %v1503_v24, %v1239_v25  ;;  %v64_v31 = vld [vmem:[%s2587_s3 + $0x18] sm:$0xff] }
  0x18   :  { %138 = vperm.xlu2 %1562, %v72_v7   ;;  %v77_v30 = vld [vmem:[%s2587_s3 + $0x80] sm:$0xff]  ;;  %v1504_v33 = vld [vmem:[%s2589_s2 + $0x24] sm:$0xf0]  ;;  %v1505_v34 = vld [vmem:[%s2589_s2 + $0x34] sm:$0xf] }
  0x19   :  { %407 = vmatpush.bf16.msra.mxu0 %v1318_v56  ;;  %525 = vmatpush.bf16.msra.mxu2 %v1322_v57  ;;  %v1237_v32 = vld [vmem:[%s2589_s2 + $0x20] sm:$0xf]  ;;  %v1247_v35 = vld [vmem:[%s2589_s2 + $0x38] sm:$0xf0]  ;;  %v1245_v38 = vld [vmem:[%s2589_s2 + $0x30] sm:$0xf] }
  0x1a   :  { %118 = vperm.xlu0 %1560, %v68_v63   ;;  %v1238_v36 = vor.u32 %v1504_v33, %v1237_v32  ;;  %v1250_v37 = vor.u32 %v1505_v34, %v1247_v35  ;;  %v1506_v39 = vld [vmem:[%s2589_s2 + $0x34] sm:$0xf0]  ;;  %v1507_v40 = vld [vmem:[%s2589_s2 + $0x44] sm:$0xf]  ;;  %v1255_v41 = vld [vmem:[%s2589_s2 + $0x48] sm:$0xf0] }
  0x1b   :  { %173 = vperm.xlu1 %1561, %v79_v1   ;;  %v1246_v42 = vor.u32 %v1506_v39, %v1245_v38  ;;  %v1258_v43 = vor.u32 %v1507_v40, %v1255_v41  ;;  %v1253_v44 = vld [vmem:[%s2589_s2 + $0x40] sm:$0xf]  ;;  %v1508_v45 = vld [vmem:[%s2589_s2 + $0x44] sm:$0xf0]  ;;  %v1509_v46 = vld [vmem:[%s2589_s2 + $0x54] sm:$0xf] }
  0x1c   :  { %v1263_v47 = vld [vmem:[%s2589_s2 + $0x58] sm:$0xf0]  ;;  %v1254_v48 = vor.u32 %v1508_v45, %v1253_v44  ;;  %v1261_v50 = vld [vmem:[%s2589_s2 + $0x50] sm:$0xf]  ;;  %v1510_v51 = vld [vmem:[%s2589_s2 + $0x54] sm:$0xf0] }
  0x1d   :  { %408 = vmatpush.bf16.msra.mxu0 %v1310_v0  ;;  %526 = vmatpush.bf16.msra.mxu2 %v1314_v2  ;;  %v1266_v49 = vor.u32 %v1509_v46, %v1263_v47  ;;  %v1511_v52 = vld [vmem:[%s2589_s2 + $0x64] sm:$0xf]  ;;  %v1271_v53 = vld [vmem:[%s2589_s2 + $0x68] sm:$0xf0]  ;;  %v1262_v54 = vor.u32 %v1510_v51, %v1261_v50  ;;  %v1269_v58 = vld [vmem:[%s2589_s2 + $0x60] sm:$0xf] }
  0x1e   :  { %v1274_v55 = vor.u32 %v1511_v52, %v1271_v53  ;;  %v1512_v59 = vld [vmem:[%s2589_s2 + $0x64] sm:$0xf0]  ;;  %v1513_v60 = vld [vmem:[%s2589_s2 + $0x74] sm:$0xf]  ;;  %v1279_v61 = vld [vmem:[%s2589_s2 + $0x78] sm:$0xf0] }
  0x1f   :  { %v1270_v63 = vor.u32 %v1512_v59, %v1269_v58  ;;  %v1282_v0 = vor.u32 %v1513_v60, %v1279_v61  ;;  %v1277_v4 = vld [vmem:[%s2589_s2 + $0x70] sm:$0xf]  ;;  %v1514_v5 = vld [vmem:[%s2589_s2 + $0x74] sm:$0xf0]  ;;  %v1515_v6 = vld [vmem:[%s2589_s2 + $0x84] sm:$0xf] }
  0x20   :  { %113 = vperm.xlu2 %1562, %v67_v18   ;;  %v1287_v7 = vld [vmem:[%s2589_s2 + $0x88] sm:$0xf0]  ;;  %v1293_v35 = vld [vmem:[%s2589_s2 + $0x90] sm:$0xf] }
  0x21   :  { %409 = vmatpush.bf16.msra.mxu0 %v1302_v8  ;;  %527 = vmatpush.bf16.msra.mxu2 %v1306_v11  ;;  %v1278_v8 = vor.u32 %v1514_v5, %v1277_v4  ;;  %v1290_v9 = vor.u32 %v1515_v6, %v1287_v7 }
  0x22   :  { %103 = vperm.xlu0 %1560, %v65_v15   ;;  %1390 = vmatmul.msk.bf16.gmra.mxu3 %vm371_vm0, %v1234_v17 }
  0x23   :  { %108 = vperm.xlu1 %1561, %v66_v16   ;;  %v1285_v16 = vld [vmem:[%s2589_s2 + $0x80] sm:$0xf] }
  0x24   :  { %410 = vmatmul.bf16.vlgmr.msra.gmra.mxu0 %v1222_v14  ;;  %528 = vmatmul.bf16.vlgmr.msra.gmra.mxu2 %v1222_v14 }
  0x26   :  { %1380 = vmatmul.msk.bf16.gmra.mxu1 %vm371_vm0, %v1234_v17  ;;  %v1516_v17 = vld [vmem:[%s2589_s2 + $0x84] sm:$0xf0] }
  0x28   :  { %178 = vperm.xlu2 %1562, %v80_v21   ;;  %v1286_v21 = vor.u32 %v1516_v17, %v1285_v16 }
  0x2a   :  { %168 = vperm.xlu0 %1560, %v78_v19   ;;  %v1517_v19 = vld [vmem:[%s2589_s2 + $0x94] sm:$0xf] }
  0x2b   :  { %93 = vperm.xlu1 %1561, %v63_v20   ;;  %v1295_v20 = vld [vmem:[%s2589_s2 + $0x98] sm:$0xf0] }
  0x2c   :  { %v1298_v24 = vor.u32 %v1517_v19, %v1295_v20 }
  0x30   :  { %163 = vperm.xlu2 %1562, %v77_v30  }
  0x32   :  { %83 = vperm.xlu0 %1560, %v61_v27   ;;  %1391 = vmatmul.msk.bf16.gmra.mxu3 %vm371_vm0, %v1242_v29 }
  0x33   :  { %88 = vperm.xlu1 %1561, %v62_v28  }
  0x34   :  { %415 = vmatmul.bf16.gmra.mxu0 %v1230_v26  ;;  %533 = vmatmul.bf16.gmra.mxu2 %v1230_v26 }
  0x36   :  { %1381 = vmatmul.msk.bf16.gmra.mxu1 %vm371_vm0, %v1242_v29 }
  0x38   :  { %98 = vperm.xlu2 %1562, %v64_v31  }
  0x42   :  { %1392 = vmatmul.msk.bf16.gmra.mxu3 %vm371_vm0, %v1250_v37 }
  0x44   :  { %420 = vmatmul.bf16.gmra.mxu0 %v1238_v36  ;;  %538 = vmatmul.bf16.gmra.mxu2 %v1238_v36  ;;  %v1518_v36 = vld [vmem:[%s2589_s2 + $0x94] sm:$0xf0] }
  0x45   :  { %v1294_v39 = vor.u32 %v1518_v36, %v1293_v35 }
  0x46   :  { %1382 = vmatmul.msk.bf16.gmra.mxu1 %vm371_vm0, %v1250_v37 }
  0x52   :  { %1393 = vmatmul.msk.bf16.gmra.mxu3 %vm371_vm0, %v1258_v43 }
  0x54   :  { %425 = vmatmul.bf16.gmra.mxu0 %v1246_v42  ;;  %543 = vmatmul.bf16.gmra.mxu2 %v1246_v42 }
  0x56   :  { %1383 = vmatmul.msk.bf16.gmra.mxu1 %vm371_vm0, %v1258_v43 }
  0x62   :  { %1394 = vmatmul.msk.bf16.gmra.mxu3 %vm371_vm0, %v1266_v49 }
  0x64   :  { %430 = vmatmul.bf16.gmra.mxu0 %v1254_v48  ;;  %548 = vmatmul.bf16.gmra.mxu2 %v1254_v48 }
  0x66   :  { %1384 = vmatmul.msk.bf16.gmra.mxu1 %vm371_vm0, %v1266_v49 }
  0x6a   :  { %v1956_v51 = vpop.permute.xlu2 %133 }
  0x72   :  { %1395 = vmatmul.msk.bf16.gmra.mxu3 %vm371_vm0, %v1274_v55  ;;  %v1966_v61 = vpop.permute.xlu2 %138 }
  0x74   :  { %435 = vmatmul.bf16.gmra.mxu0 %v1262_v54  ;;  %553 = vmatmul.bf16.gmra.mxu2 %v1262_v54  ;;  %v1864_v56 = vpop.permute.xlu0 %153 }
  0x75   :  { %v1882_v62 = vpop.permute.xlu1 %143 }
  0x76   :  { %1385 = vmatmul.msk.bf16.gmra.mxu1 %vm371_vm0, %v1274_v55 }
  0x7c   :  { %v1868_v57 = vpop.permute.xlu0 %158 }
  0x7d   :  { %v1887_v2 = vpop.permute.xlu1 %148 }
  0x82   :  { %1396 = vmatmul.msk.bf16.gmra.mxu3 %vm371_vm0, %v1282_v0 }
  0x84   :  { %440 = vmatmul.bf16.gmra.mxu0 %v1270_v63  ;;  %558 = vmatmul.bf16.gmra.mxu2 %v1270_v63  ;;  %v1884_v1 = vpop.permute.xlu0 %123 }
  0x85   :  { %v1904_v10 = vpop.permute.xlu1 %128 }
  0x86   :  { %1386 = vmatmul.msk.bf16.gmra.mxu1 %vm371_vm0, %v1282_v0 }
  0x8c   :  { %v1890_v3 = vpop.permute.xlu0 %118 }
  0x8d   :  { %v1908_v14 = vpop.permute.xlu1 %173 }
  0x8e   :  { %2614 = vst [vmem:[#allocation2_spill] sm:$0xff] %v1908_v14 }
  0x92   :  { %1397 = vmatmul.msk.bf16.gmra.mxu3 %vm371_vm0, %v1290_v9 }
  0x93   :  { %v470_v12 = vpop.f32.mrf.mxu1 }
  0x94   :  { %445 = vmatmul.bf16.gmra.mxu0 %v1278_v8  ;;  %563 = vmatmul.bf16.gmra.mxu2 %v1278_v8  ;;  %v104_v11 = vpop.permute.xlu0 %103 }
  0x95   :  { %v588_v13 = vpop.f32.mrf.mxu3  ;;  %v1929_v28 = vpop.permute.xlu1 %108 }
  0x96   :  { %1387 = vmatmul.msk.bf16.gmra.mxu1 %vm371_vm0, %v1290_v9  ;;  %2617 = vst [vmem:[#allocation5_spill] sm:$0xff] %v1929_v28 }
  0x9b   :  { %v1918_v18 = vpop.f32.mrf.mxu1 }
  0x9c   :  { %v1910_v15 = vpop.permute.xlu0 %168 }
  0x9d   :  { %2615 = vst [vmem:[#allocation3_spill] sm:$0xff] %v1910_v15  ;;  %v1926_v22 = vpop.f32.mrf.mxu3  ;;  %v94_v41 = vpop.permute.xlu1 %93  ;;  %v2065_v15 = vld [vmem:[%s2590_s1 + $0x30] sm:$0xff] }
  0x9e   :  { %2616 = vst [vmem:[#allocation4_spill] sm:$0xff] %v1926_v22  ;;  %v2089_v22 = vld [vmem:[%s2590_s1 + $0x40] sm:$0xff] }
  0x9f   :  { %2643 = vst [vmem:[#allocation31_spill] sm:$0xff] %v2065_v15 }
  0xa1   :  { %v411_v23 = vpop.f32.mrf.mxu0 }
  0xa2   :  { %1398 = vmatmul.msk.bf16.gmra.mxu3 %vm371_vm0, %v1298_v24 }
  0xa3   :  { %v475_v27 = vpop.f32.mrf.mxu1 }
  0xa4   :  { %450 = vmatmul.bf16.gmra.mxu0 %v1286_v21  ;;  %568 = vmatmul.bf16.gmra.mxu2 %v1286_v21  ;;  %v84_v25 = vpop.permute.xlu0 %83 }
  0xa5   :  { %v412_v26 = vadd.f32 %v411_v23, %v84_v25  ;;  %v593_v31 = vpop.f32.mrf.mxu3 }
  0xa6   :  { %1388 = vmatmul.msk.bf16.gmra.mxu1 %vm371_vm0, %v1298_v24 }
  0xa7   :  { %v1931_v29 = vadd.f32 %v470_v12, %v412_v26  ;;  %v529_v30 = vpop.f32.mrf.mxu2  ;;  %v114_v12 = vpop.permute.xlu2 %113 }
  0xa8   :  { %v530_v32 = vadd.f32 %v529_v30, %v84_v25 }
  0xa9   :  { %2618 = vst [vmem:[#allocation6_spill] sm:$0xff] %v1931_v29  ;;  %v1933_v33 = vpop.f32.mrf.mxu0  ;;  %v2055_v29 = vld [vmem:[%s2590_s1 + $0x20] sm:$0xff] }
  0xaa   :  { %v1936_v34 = vadd.f32 %v588_v13, %v530_v32  ;;  %2641 = vst [vmem:[#allocation29_spill] sm:$0xff] %v2055_v29 }
  0xab   :  { %v1944_v37 = vpop.f32.mrf.mxu1 }
  0xac   :  { %2619 = vst [vmem:[#allocation7_spill] sm:$0xff] %v1936_v34  ;;  %v2038_v34 = vld [vmem:[%s2590_s1] sm:$0xff] }
  0xad   :  { %2620 = vst [vmem:[#allocation8_spill] sm:$0xff] %v1944_v37  ;;  %v1948_v40 = vpop.f32.mrf.mxu3 }
  0xae   :  { %2622 = vst [vmem:[#allocation10_spill] sm:$0xff] %v1948_v40  ;;  %v2074_v40 = vld [vmem:[%s2590_s1 + $0x70] sm:$0xff] }
  0xaf   :  { %v1946_v38 = vpop.f32.mrf.mxu2  ;;  %2638 = vst [vmem:[#allocation26_spill] sm:$0xff] %v2038_v34 }
  0xb0   :  { %2621 = vst [vmem:[#allocation9_spill] sm:$0xff] %v1946_v38 }
  0xb1   :  { %v416_v42 = vpop.f32.mrf.mxu0 }
  0xb2   :  { %v417_v43 = vadd.f32 %v416_v42, %v94_v41 }
  0xb3   :  { %v480_v45 = vpop.f32.mrf.mxu1 }
  0xb4   :  { %v1950_v44 = vadd.f32 %v475_v27, %v417_v43  ;;  %455 = vmatmul.bf16.gmra.mxu0 %v1294_v39  ;;  %573 = vmatmul.bf16.gmra.mxu2 %v1294_v39 }
  0xb5   :  { %v598_v47 = vpop.f32.mrf.mxu3 }
  0xb6   :  { %2623 = vst [vmem:[#allocation11_spill] sm:$0xff] %v1950_v44 }
  0xb7   :  { %v534_v46 = vpop.f32.mrf.mxu2 }
  0xb8   :  { %v535_v48 = vadd.f32 %v534_v46, %v94_v41 }
  0xb9   :  { %v1952_v49 = vpop.f32.mrf.mxu0 }
  0xba   :  { %v1954_v50 = vadd.f32 %v593_v31, %v535_v48 }
  0xbb   :  { %v1958_v52 = vpop.f32.mrf.mxu1 }
  0xbc   :  { %2624 = vst [vmem:[#allocation12_spill] sm:$0xff] %v1954_v50  ;;  %v2045_v50 = vld [vmem:[%s2590_s1 + $0x10] sm:$0xff] }
  0xbd   :  { %v1962_v54 = vpop.f32.mrf.mxu3  ;;  %2639 = vst [vmem:[#allocation27_spill] sm:$0xff] %v2045_v50 }
  0xbe   :  { %2626 = vst [vmem:[#allocation14_spill] sm:$0xff] %v1962_v54  ;;  %v2095_v54 = vld [vmem:[%s2590_s1 + $0x68] sm:$0xff] }
  0xbf   :  { %v1960_v53 = vpop.f32.mrf.mxu2 }
  0xc0   :  { %2625 = vst [vmem:[#allocation13_spill] sm:$0xff] %v1960_v53  ;;  %v2127_v53 = vld [vmem:[%s2590_s1 + $0x60] sm:$0xff] }
  0xc1   :  { %v421_v55 = vpop.f32.mrf.mxu0 }
  0xc2   :  { %v422_v58 = vadd.f32 %v421_v55, %v104_v11 }
  0xc3   :  { %v485_v60 = vpop.f32.mrf.mxu1 }
  0xc4   :  { %v1964_v59 = vadd.f32 %v480_v45, %v422_v58 }
  0xc5   :  { %v603_v0 = vpop.f32.mrf.mxu3 }
  0xc6   :  { %2627 = vst [vmem:[#allocation15_spill] sm:$0xff] %v1964_v59 }
  0xc7   :  { %v539_v63 = vpop.f32.mrf.mxu2 }
  0xc8   :  { %v540_v4 = vadd.f32 %v539_v63, %v104_v11 }
  0xc9   :  { %v1968_v5 = vpop.f32.mrf.mxu0 }
  0xca   :  { %v1970_v6 = vadd.f32 %v598_v47, %v540_v4  ;;  %v2018_v4 = vpop.permute.xlu2 %178 }
  0xcb   :  { %v1972_v7 = vpop.f32.mrf.mxu1  ;;  %2634 = vst [vmem:[#allocation22_spill] sm:$0xff] %v2018_v4 }
  0xcc   :  { %2628 = vst [vmem:[#allocation16_spill] sm:$0xff] %v1970_v6 }
  0xcd   :  { %v1976_v9 = vpop.f32.mrf.mxu3 }
  0xce   :  { %2630 = vst [vmem:[#allocation18_spill] sm:$0xff] %v1976_v9  ;;  %v682_v9 = vunpack.c.l.bf16 %v2127_v53 }
  0xcf   :  { %v1974_v8 = vpop.f32.mrf.mxu2 }
  0xd0   :  { %2629 = vst [vmem:[#allocation17_spill] sm:$0xff] %v1974_v8 }
  0xd1   :  { %v426_v13 = vpop.f32.mrf.mxu0 }
  0xd2   :  { %v427_v16 = vadd.f32 %v426_v13, %v114_v12 }
  0xd3   :  { %v490_v19 = vpop.f32.mrf.mxu1 }
  0xd4   :  { %v1978_v17 = vadd.f32 %v485_v60, %v427_v16 }
  0xd5   :  { %v608_v21 = vpop.f32.mrf.mxu3 }
  0xd6   :  { %2631 = vst [vmem:[#allocation19_spill] sm:$0xff] %v1978_v17 }
  0xd7   :  { %v544_v20 = vpop.f32.mrf.mxu2 }
  0xd8   :  { %v545_v23 = vadd.f32 %v544_v20, %v114_v12 }
  0xd9   :  { %v1980_v11 = vpop.f32.mrf.mxu0 }
  0xda   :  { %v1982_v24 = vadd.f32 %v603_v0, %v545_v23  ;;  %v2026_v23 = vpop.permute.xlu1 %88 }
  0xdb   :  { %v1984_v25 = vpop.f32.mrf.mxu1  ;;  %2636 = vst [vmem:[#allocation24_spill] sm:$0xff] %v2026_v23  ;;  %v414_v4 = vadd.f32 %v1933_v33, %v2026_v23  ;;  %v2060_v33 = vld [vmem:[%s2590_s1 + $0x28] sm:$0xff] }
  0xdc   :  { %2632 = vst [vmem:[#allocation20_spill] sm:$0xff] %v1982_v24 }
  0xdd   :  { %v1988_v27 = vpop.f32.mrf.mxu3  ;;  %2642 = vst [vmem:[#allocation30_spill] sm:$0xff] %v2060_v33 }
  0xdf   :  { %v1986_v26 = vpop.f32.mrf.mxu2 }
  0xe1   :  { %v431_v30 = vpop.f32.mrf.mxu0 }
  0xe2   :  { %v432_v31 = vadd.f32 %v431_v30, %v1884_v1 }
  0xe3   :  { %v1993_v35 = vpop.f32.mrf.mxu1 }
  0xe4   :  { %v1991_v32 = vadd.f32 %v490_v19, %v432_v31 }
  0xe5   :  { %v1995_v39 = vpop.f32.mrf.mxu3 }
  0xe7   :  { %v549_v36 = vpop.f32.mrf.mxu2 }
  0xe8   :  { %v550_v41 = vadd.f32 %v549_v36, %v1884_v1 }
  0xe9   :  { %v1998_v42 = vpop.f32.mrf.mxu0 }
  0xea   :  { %v2000_v43 = vadd.f32 %v608_v21, %v550_v41  ;;  %v2024_v21 = vpop.permute.xlu2 %163  ;;  %v2033_v41 = vld [vmem:[%s2590_s1 + $0x8] sm:$0xff] }
  0xeb   :  { %v2002_v45 = vpop.f32.mrf.mxu1  ;;  %2635 = vst [vmem:[#allocation23_spill] sm:$0xff] %v2024_v21  ;;  %v2050_v21 = vld [vmem:[%s2590_s1 + $0x18] sm:$0xff] }
  0xec   :  { %2633 = vst [vmem:[#allocation21_spill] sm:$0xff] %v2000_v43  ;;  %v2099_v43 = vadd.f32 %v1918_v18, %v414_v4  ;;  %v2116_v18 = vld [vmem:[%s2590_s1 + $0x48] sm:$0xff]  ;;  %v2121_v4 = vld [vmem:[%s2590_s1 + $0x50] sm:$0xff] }
  0xed   :  { %v2008_v48 = vpop.f32.mrf.mxu3  ;;  %2637 = vst [vmem:[#allocation25_spill] sm:$0xff] %v2033_v41  ;;  %v676_v29 = vunpack.c.l.bf16 %v2116_v18 }
  0xee   :  { %2640 = vst [vmem:[#allocation28_spill] sm:$0xff] %v2050_v21  ;;  %v678_v21 = vunpack.c.l.bf16 %v2121_v4 }
  0xef   :  { %v2004_v46 = vpop.f32.mrf.mxu2  ;;  %2645 = vst [vmem:[#allocation33_spill] sm:$0xff] %v2099_v43  ;;  %v2132_v43 = vadd.f32 %v1968_v5, %v1929_v28 }
  0xf1   :  { %v2006_v47 = vpop.f32.mrf.mxu0 }
  0xf2   :  { %v2069_v24 = vpop.permute.xlu2 %98 }
  0xf3   :  { %v2010_v55 = vpop.f32.mrf.mxu1  ;;  %2644 = vst [vmem:[#allocation32_spill] sm:$0xff] %v2069_v24  ;;  %v2111_v41 = vadd.f32 %v1952_v49, %v2069_v24  ;;  %v686_v49 = vunpack.c.l.bf16 %v2074_v40  ;;  %v684_v24 = vunpack.c.l.bf16 %v2095_v54 }
  0xf5   :  { %v2014_v63 = vpop.f32.mrf.mxu3  ;;  %2646 = vst [vmem:[#allocation34_spill] sm:$0xff] %v2111_v41 }
  0xf7   :  { %v2012_v58 = vpop.f32.mrf.mxu2 }
  0xf9   :  { %v438_v60 = vpop.f32.mrf.mxu0 }
  0xfa   :  { %v439_v33 = vadd.f32 %v438_v60, %v1966_v61  ;;  %v437_v60 = vadd.f32 %v2006_v47, %v1956_v51 }
  0xfb   :  { %v502_v1 = vpop.f32.mrf.mxu1 }
  0xfd   :  { %v2020_v13 = vpop.f32.mrf.mxu3 }
  0xff   :  { %v2016_v0 = vpop.f32.mrf.mxu2 }
 0x101   :  { %v441_v12 = vpop.f32.mrf.mxu0 }
 0x102   :  { %v442_v59 = vadd.f32 %v441_v12, %v1882_v62 }
 0x103   :  { %v505_v20 = vpop.f32.mrf.mxu1 }
 0x104   :  { %v501_v17 = vadd.f32 %v2010_v55, %v442_v59  ;;  %v683_v59 = vunpack.c.h.bf16 %v2127_v53 }
 0x105   :  { %v2028_v31 = vpop.f32.mrf.mxu3 }
 0x107   :  { %v2022_v16 = vpop.f32.mrf.mxu2 }
 0x109   :  { %v443_v19 = vpop.f32.mrf.mxu0 }
 0x10a   :  { %v444_v44 = vadd.f32 %v443_v19, %v1887_v2  ;;  %v2107_v19 = vld [vmem:[%s2590_s1 + $0x78] sm:$0xff] }
 0x10b   :  { %v507_v6 = vpop.f32.mrf.mxu1  ;;  %v688_v5 = vunpack.c.l.bf16 %v2107_v19 }
 0x10d   :  { %v625_v23 = vpop.f32.mrf.mxu3 }
 0x10f   :  { %v561_v30 = vpop.f32.mrf.mxu2 }
 0x110   :  { %v562_v37 = vadd.f32 %v561_v30, %v1887_v2  ;;  %v722_v2 = vadd.f32 %v682_v9, %v501_v17 }
 0x111   :  { %v446_v36 = vpop.f32.mrf.mxu0 }
 0x112   :  { %v447_v14 = vadd.f32 %v446_v36, %v1864_v56  ;;  %v2084_v36 = vld [vmem:[%s2590_s1 + $0x38] sm:$0xff]  ;;  %v621_v53 = vadd.f32 %v2020_v13, %v562_v37  ;;  %v762_v37 = vmax.f32 %v722_v2, 0.0 }
 0x113   :  { %v2158_v41 = vpop.f32.mrf.mxu1 }
 0x114   :  { %v506_v34 = vadd.f32 %v505_v20, %v447_v14  ;;  %v2141_v14 = vld [vmem:[%s2590_s1 + $0x58] sm:$0xff]  ;;  %v503_v20 = vadd.f32 %v502_v1, %v444_v44  ;;  %v429_v1 = vadd.f32 %v1980_v11, %v1890_v3  ;;  %v685_v11 = vunpack.c.h.bf16 %v2095_v54 }
 0x115   :  { %v680_v28 = vunpack.c.l.bf16 %v2141_v14  ;;  %v2179_v13 = vpop.f32.mrf.mxu3 }
 0x116   :  { %v726_v8 = vadd.f32 %v686_v49, %v506_v34  ;;  %v560_v34 = vadd.f32 %v2022_v16, %v1882_v62 }
 0x117   :  { %v564_v50 = vpop.f32.mrf.mxu2 }
 0x118   :  { %v565_v15 = vadd.f32 %v564_v50, %v1864_v56  ;;  %v498_v56 = vadd.f32 %v2002_v45, %v439_v33  ;;  %v724_v50 = vadd.f32 %v684_v24, %v503_v20  ;;  %v766_v55 = vmax.f32 %v726_v8, 0.0 }
 0x119   :  { %v448_v12 = vpop.f32.mrf.mxu0  ;;  %v557_v24 = vadd.f32 %v2016_v0, %v1966_v61  ;;  %v555_v8 = vadd.f32 %v2012_v58, %v1956_v51  ;;  %v619_v9 = vadd.f32 %v2014_v63, %v560_v34  ;;  %v725_v51 = vadd.f32 %v685_v11, %v621_v53  ;;  %v2650_v34 = vld [vmem:[#allocation8_spill] sm:$0xff]  ;;  %v2651_v11 = vld [vmem:[#allocation5_spill] sm:$0xff]  ;;  %v2656_v53 = vld [vmem:[#allocation18_spill] sm:$0xff] }
 0x11a   :  { %v449_v38 = vadd.f32 %v448_v12, %v1868_v57  ;;  %v434_v12 = vadd.f32 %v1998_v42, %v1904_v10  ;;  %v496_v42 = vadd.f32 %v1993_v35, %v437_v60  ;;  %v720_v54 = vadd.f32 %v680_v28, %v498_v56 }
 0x11b   :  { %v764_v35 = vmax.f32 %v724_v50, 0.0  ;;  %v552_v28 = vadd.f32 %v2004_v46, %v1904_v10  ;;  %v488_v58 = vadd.f32 %v1972_v7, %v429_v1  ;;  %v2188_v20 = vpop.f32.mrf.mxu1  ;;  %v723_v60 = vadd.f32 %v683_v59, %v619_v9  ;;  %v2649_v59 = vld [vmem:[#allocation34_spill] sm:$0xff] }
 0x11c   :  { %v508_v44 = vadd.f32 %v507_v6, %v449_v38  ;;  %v624_v38 = vadd.f32 %v2028_v31, %v565_v15  ;;  %v687_v6 = vunpack.c.h.bf16 %v2074_v40  ;;  %v689_v15 = vunpack.c.h.bf16 %v2107_v19 }
 0x11d   :  { %v493_v40 = vadd.f32 %v1984_v25, %v434_v12  ;;  %v718_v0 = vadd.f32 %v678_v21, %v496_v42  ;;  %v681_v31 = vunpack.c.h.bf16 %v2141_v14  ;;  %v616_v25 = vadd.f32 %v2008_v48, %v557_v24  ;;  %v2652_v42 = vld [vmem:[#allocation17_spill] sm:$0xff] }
 0x11e   :  { %v728_v47 = vadd.f32 %v688_v5, %v508_v44  ;;  %v727_v61 = vadd.f32 %v687_v6, %v624_v38  ;;  %v760_v21 = vmax.f32 %v720_v54, 0.0  ;;  %v614_v19 = vadd.f32 %v1995_v39, %v555_v8 }
 0x11f   :  { %v566_v30 = vpop.f32.mrf.mxu2  ;;  %v716_v63 = vadd.f32 %v676_v29, %v493_v40  ;;  %v547_v14 = vadd.f32 %v1986_v26, %v1890_v3  ;;  %v2647_v10 = vunpack.c.l.bf16 %v2089_v22  ;;  %v758_v48 = vmax.f32 %v718_v0, 0.0 }
 0x120   :  { %v768_v49 = vmax.f32 %v728_v47, 0.0  ;;  %v567_v45 = vadd.f32 %v566_v30, %v1868_v57  ;;  %v679_v57 = vunpack.c.h.bf16 %v2121_v4  ;;  %v767_v5 = vmax.f32 %v727_v61, 0.0  ;;  %v2654_v30 = vld [vmem:[#allocation31_spill] sm:$0xff]  ;;  %v2219_v61 = vpop.f32.mrf.mxu3 }
 0x121   :  { %v2172_v62 = vpop.f32.mrf.mxu0  ;;  %v714_v46 = vadd.f32 %v2647_v10, %v1991_v32  ;;  %v677_v29 = vunpack.c.h.bf16 %v2116_v18  ;;  %v611_v7 = vadd.f32 %v1988_v27, %v552_v28  ;;  %v765_v12 = vmax.f32 %v725_v51, 0.0 }
 0x122   :  { %v812_v16 = vpack.c.bf16 %v768_v49, %v766_v55  ;;  %v626_v17 = vadd.f32 %v625_v23, %v567_v45  ;;  %v810_v23 = vpack.c.bf16 %v764_v35, %v762_v37  ;;  %v721_v56 = vadd.f32 %v681_v31, %v616_v25  ;;  %v2653_v55 = vld [vmem:[#allocation19_spill] sm:$0xff]  ;;  %v2658_v35 = vld [vmem:[#allocation9_spill] sm:$0xff] }
 0x123   :  { %v483_v3 = vadd.f32 %v1958_v52, %v2132_v43  ;;  %v2648_v26 = vunpack.c.l.bf16 %v2084_v36  ;;  %v808_v32 = vpack.c.bf16 %v760_v21, %v758_v48  ;;  %v756_v47 = vmax.f32 %v716_v63, 0.0  ;;  %v2662_v31 = vld [vmem:[#allocation13_spill] sm:$0xff]  ;;  %v2666_v21 = vld [vmem:[#allocation15_spill] sm:$0xff] }
 0x124   :  { %938 = vmatpush.bf16.msrb.mxu1 %v812_v16  ;;  %v729_v33 = vadd.f32 %v689_v15, %v626_v17  ;;  %v478_v38 = vadd.f32 %v2650_v34, %v2649_v59  ;;  %v763_v18 = vmax.f32 %v723_v60, 0.0  ;;  %v719_v6 = vadd.f32 %v679_v57, %v614_v19  ;;  %v2657_v16 = vld [vmem:[#allocation24_spill] sm:$0xff]  ;;  %v2663_v25 = vld [vmem:[#allocation21_spill] sm:$0xff] }
 0x125   :  { %v712_v50 = vadd.f32 %v2648_v26, %v488_v58  ;;  %v675_v27 = vunpack.c.h.bf16 %v2089_v22  ;;  %v542_v2 = vadd.f32 %v2652_v42, %v2651_v11  ;;  %v2655_v49 = vunpack.c.l.bf16 %v2654_v30  ;;  %v2659_v22 = vld [vmem:[#allocation30_spill] sm:$0xff]  ;;  %v2661_v57 = vld [vmem:[#allocation32_spill] sm:$0xff]  ;;  %v2667_v19 = vld [vmem:[#allocation29_spill] sm:$0xff] }
 0x126   :  { %v769_v4 = vmax.f32 %v729_v33, 0.0  ;;  %v754_v43 = vmax.f32 %v714_v46, 0.0  ;;  %v673_v24 = vunpack.c.h.bf16 %v2084_v36  ;;  %v606_v45 = vadd.f32 %v2656_v53, %v547_v14  ;;  %v2664_v58 = vld [vmem:[#allocation28_spill] sm:$0xff]  ;;  %v2669_v46 = vld [vmem:[#allocation14_spill] sm:$0xff]  ;;  %v2671_v26 = vld [vmem:[#allocation25_spill] sm:$0xff] }
 0x127   :  { %v2195_v44 = vpop.f32.mrf.mxu2  ;;  %v710_v52 = vadd.f32 %v2655_v49, %v2653_v55  ;;  %v811_v15 = vpack.c.bf16 %v765_v12, %v763_v18  ;;  %v761_v40 = vmax.f32 %v721_v56, 0.0  ;;  %v717_v54 = vadd.f32 %v677_v29, %v611_v7  ;;  %v515_v7 = vpop.f32.mrf.mxu1  ;;  %v2674_v18 = vld [vmem:[#allocation27_spill] sm:$0xff]  ;;  %v2676_v11 = vld [vmem:[#allocation10_spill] sm:$0xff]  ;;  %v2677_v55 = vld [vmem:[#allocation20_spill] sm:$0xff] }
 0x128   :  { %939 = vmatpush.bf16.msrb.mxu1 %v810_v23  ;;  %v813_v1 = vpack.c.bf16 %v769_v4, %v767_v5  ;;  %v532_v8 = vadd.f32 %v2658_v35, %v2657_v16  ;;  %v2660_v9 = vunpack.c.l.bf16 %v2659_v22  ;;  %v806_v0 = vpack.c.bf16 %v756_v47, %v754_v43  ;;  %v2678_v49 = vld [vmem:[#allocation4_spill] sm:$0xff] }
 0x129   :  { %v2199_v39 = vpop.f32.mrf.mxu0  ;;  %v752_v37 = vmax.f32 %v712_v50, 0.0  ;;  %v537_v28 = vadd.f32 %v2662_v31, %v2661_v57  ;;  %v759_v36 = vmax.f32 %v719_v6, 0.0  ;;  %v715_v33 = vadd.f32 %v675_v27, %v2663_v25  ;;  %v2267_v25 = vld [vmem:[%s2590_s1 + $0x98] sm:$0xff] }
 0x12a   :  { %1056 = vmatpush.bf16.msrb.mxu0 %v813_v1  ;;  %v708_v17 = vadd.f32 %v2660_v9, %v483_v3  ;;  %v671_v51 = vunpack.c.h.bf16 %v2654_v30  ;;  %v2665_v63 = vunpack.c.l.bf16 %v2664_v58  ;;  %v2668_v5 = vunpack.c.l.bf16 %v2667_v19  ;;  %v2670_v3 = vld [vmem:[#allocation33_spill] sm:$0xff] }
 0x12b   :  { %v750_v60 = vmax.f32 %v710_v52, 0.0  ;;  %v669_v10 = vunpack.c.h.bf16 %v2659_v22  ;;  %v601_v48 = vadd.f32 %v2669_v46, %v542_v2  ;;  %v809_v1 = vpack.c.bf16 %v761_v40, %v759_v36  ;;  %v2680_v22 = vld [vmem:[#allocation3_spill] sm:$0xff] }
 0x12c   :  { %940 = vmatpush.bf16.msrb.mxu1 %v808_v32  ;;  %v704_v23 = vadd.f32 %v2665_v63, %v478_v38  ;;  %v706_v4 = vadd.f32 %v2668_v5, %v2666_v21  ;;  %v757_v12 = vmax.f32 %v717_v54, 0.0  ;;  %v713_v56 = vadd.f32 %v673_v24, %v606_v45  ;;  %v2673_v38 = vld [vmem:[#allocation11_spill] sm:$0xff]  ;;  %v2679_v24 = vld [vmem:[#allocation2_spill] sm:$0xff] }
 0x12d   :  { %v2672_v50 = vunpack.c.l.bf16 %v2671_v26  ;;  %v804_v47 = vpack.c.bf16 %v752_v37, %v750_v60  ;;  %v748_v59 = vmax.f32 %v708_v17, 0.0  ;;  %v667_v34 = vunpack.c.h.bf16 %v2667_v19  ;;  %v2262_v36 = vld [vmem:[%s2590_s1 + $0x88] sm:$0xff]  ;;  %v633_v60 = vpop.f32.mrf.mxu3 }
 0x12e   :  { %1057 = vmatpush.bf16.msrb.mxu0 %v811_v15  ;;  %v2675_v6 = vunpack.c.l.bf16 %v2674_v18  ;;  %v596_v42 = vadd.f32 %v2676_v11, %v537_v28  ;;  %v755_v2 = vmax.f32 %v715_v33, 0.0  ;;  %v711_v30 = vadd.f32 %v671_v51, %v2677_v55  ;;  %v2251_v15 = vld [vmem:[%s2590_s1 + $0x90] sm:$0xff]  ;;  %v2686_v21 = vld [vmem:[#allocation23_spill] sm:$0xff] }
 0x12f   :  { %v2230_v14 = vpop.f32.mrf.mxu2  ;;  %v2237_v32 = vadd.f32 %v2672_v50, %v2670_v3  ;;  %v591_v52 = vadd.f32 %v2678_v49, %v532_v8  ;;  %v746_v43 = vmax.f32 %v706_v4, 0.0  ;;  %v663_v45 = vunpack.c.h.bf16 %v2674_v18  ;;  %v2681_v8 = vld [vmem:[#allocation6_spill] sm:$0xff]  ;;  %v2684_v33 = vld [vmem:[#allocation16_spill] sm:$0xff]  ;;  %v1540_v55 = vld [vmem:[%s2591_s4 + $0x4] sm:$0xf0] }
 0x130   :  { %941 = vmatpush.bf16.msrb.mxu1 %v806_v0  ;;  %v702_v27 = vadd.f32 %v2675_v6, %v2673_v38  ;;  %v807_v40 = vpack.c.bf16 %v757_v12, %v755_v2  ;;  %v753_v54 = vmax.f32 %v713_v56, 0.0  ;;  %v744_v16 = vmax.f32 %v704_v23, 0.0  ;;  %v2682_v0 = vld [vmem:[#allocation26_spill] sm:$0xff] }
 0x131   :  { %v456_v29 = vpop.f32.mrf.mxu0  ;;  %v709_v35 = vadd.f32 %v669_v10, %v601_v48  ;;  %v454_v9 = vadd.f32 %v2199_v39, %v2680_v22  ;;  %v802_v17 = vpack.c.bf16 %v748_v59, %v746_v43  ;;  %v2683_v37 = vunpack.c.l.bf16 %v2682_v0  ;;  %v2690_v43 = vld [vmem:[#allocation7_spill] sm:$0xff] }
 0x132   :  { %1058 = vmatpush.bf16.msrb.mxu0 %v809_v1  ;;  %v457_v53 = vadd.f32 %v456_v29, %v2679_v24  ;;  %v740_v31 = vmax.f32 %v2237_v32, 0.0  ;;  %v742_v28 = vmax.f32 %v702_v27, 0.0  ;;  %v751_v39 = vmax.f32 %v711_v30, 0.0  ;;  %v2282_v29 = vld [vmem:[%s2590_s1 + $0x80] sm:$0xff] }
 0x133   :  { %v698_v57 = vadd.f32 %v2683_v37, %v2681_v8  ;;  %v707_v51 = vadd.f32 %v667_v34, %v2684_v33  ;;  %v2685_v63 = vunpack.c.h.bf16 %v2664_v58  ;;  %v452_v19 = vadd.f32 %v2172_v62, %v2686_v21  ;;  %v2688_v62 = vld [vmem:[#allocation12_spill] sm:$0xff]  ;;  %v2689_v32 = vld [vmem:[#allocation22_spill] sm:$0xff]  ;;  %v517_v34 = vpop.f32.mrf.mxu1 }
 0x134   :  { %942 = vmatpush.bf16.msrb.mxu1 %v804_v47  ;;  %v516_v5 = vadd.f32 %v515_v7, %v457_v53  ;;  %v694_v4 = vunpack.c.l.bf16 %v2251_v15  ;;  %v2687_v46 = vunpack.c.h.bf16 %v2671_v26  ;;  %v805_v1 = vpack.c.bf16 %v753_v54, %v751_v39 }
 0x135   :  { %v705_v23 = vadd.f32 %v2685_v63, %v596_v42  ;;  %v800_v12 = vpack.c.bf16 %v744_v16, %v742_v28  ;;  %v749_v56 = vmax.f32 %v709_v35, 0.0  ;;  %v703_v7 = vadd.f32 %v663_v45, %v2688_v62  ;;  %v635_v33 = vpop.f32.mrf.mxu3  ;;  %v1542_v62 = vld [vmem:[%s2591_s4 + $0x14] sm:$0xf0] }
 0x136   :  { %1059 = vmatpush.bf16.msrb.mxu0 %v807_v40  ;;  %v2277_v48 = vadd.f32 %v2687_v46, %v591_v52  ;;  %v513_v3 = vadd.f32 %v2188_v20, %v454_v9  ;;  %v692_v50 = vunpack.c.l.bf16 %v2262_v36  ;;  %v696_v26 = vunpack.c.l.bf16 %v2267_v25  ;;  %v1401_v20 = vld [vmem:[%s2591_s4] sm:$0xf] }
 0x137   :  { %v574_v10 = vpop.f32.mrf.mxu2  ;;  %v747_v38 = vmax.f32 %v707_v51, 0.0  ;;  %v738_v18 = vmax.f32 %v698_v57, 0.0  ;;  %v745_v6 = vmax.f32 %v705_v23, 0.0  ;;  %v511_v27 = vadd.f32 %v2158_v41, %v452_v19 }
 0x138   :  { %943 = vmatpush.bf16.msrb.mxu1 %v802_v17  ;;  %v575_v59 = vadd.f32 %v574_v10, %v2679_v24  ;;  %v690_v11 = vunpack.c.l.bf16 %v2282_v29  ;;  %v734_v42 = vadd.f32 %v694_v4, %v516_v5  ;;  %v572_v30 = vadd.f32 %v2230_v14, %v2680_v22 }
 0x139   :  { %v458_v58 = vpop.f32.mrf.mxu0  ;;  %v803_v49 = vpack.c.bf16 %v749_v56, %v747_v38  ;;  %v798_v52 = vpack.c.bf16 %v740_v31, %v738_v18  ;;  %v2691_v41 = vunpack.c.h.bf16 %v2682_v0  ;;  %v732_v53 = vadd.f32 %v692_v50, %v513_v3  ;;  %v1409_v56 = vld [vmem:[%s2591_s4 + $0x10] sm:$0xf]  ;;  %v1541_v50 = vld [vmem:[%s2591_s4 + $0x14] sm:$0xf]  ;;  %v1543_v38 = vld [vmem:[%s2591_s4 + $0x24] sm:$0xf] }
 0x13a   :  { %v459_v47 = vadd.f32 %v458_v58, %v2689_v32  ;;  %1060 = vmatpush.bf16.msrb.mxu0 %v805_v1  ;;  %v743_v40 = vmax.f32 %v703_v7, 0.0  ;;  %v741_v54 = vmax.f32 %v2277_v48, 0.0  ;;  %v570_v16 = vadd.f32 %v2195_v44, %v2686_v21  ;;  %v1419_v18 = vld [vmem:[%s2591_s4 + $0x28] sm:$0xf0] }
 0x13b   :  { %v699_v24 = vadd.f32 %v2691_v41, %v2690_v43  ;;  %v634_v35 = vadd.f32 %v633_v60, %v575_v59  ;;  %v695_v9 = vunpack.c.h.bf16 %v2251_v15  ;;  %v1402_v17 = vor.u32 %v1540_v55, %v1401_v20  ;;  %v1544_v59 = vld [vmem:[%s2591_s4 + $0x24] sm:$0xf0]  ;;  %v1427_v20 = vld [vmem:[%s2591_s4 + $0x38] sm:$0xf0]  ;;  %v1547_v43 = vld [vmem:[%s2591_s4 + $0x44] sm:$0xf] }
 0x13c   :  { %v518_v2 = vadd.f32 %v517_v34, %v459_v47  ;;  %944 = vmatpush.bf16.msrb.mxu1 %v800_v12  ;;  %v730_v14 = vadd.f32 %v690_v11, %v511_v27  ;;  %v774_v22 = vmax.f32 %v734_v42, 0.0  ;;  %v801_v0 = vpack.c.bf16 %v745_v6, %v743_v40  ;;  %v1425_v27 = vld [vmem:[%s2591_s4 + $0x30] sm:$0xf]  ;;  %v1546_v11 = vld [vmem:[%s2591_s4 + $0x34] sm:$0xf0] }
 0x13d   :  { %v631_v57 = vadd.f32 %v2219_v61, %v572_v30  ;;  %v697_v28 = vunpack.c.h.bf16 %v2267_v25  ;;  %v693_v39 = vunpack.c.h.bf16 %v2262_v36  ;;  %v772_v44 = vmax.f32 %v732_v53, 0.0  ;;  %v1539_v61 = vld [vmem:[%s2591_s4 + $0x4] sm:$0xf]  ;;  %v1403_v36 = vld [vmem:[%s2591_s4 + $0x8] sm:$0xf0] }
 0x13e   :  { %v736_v45 = vadd.f32 %v696_v26, %v518_v2  ;;  %1061 = vmatpush.bf16.msrb.mxu0 %v803_v49  ;;  %v739_v63 = vmax.f32 %v699_v24, 0.0  ;;  %v629_v15 = vadd.f32 %v2179_v13, %v570_v16  ;;  %v735_v21 = vadd.f32 %v695_v9, %v634_v35  ;;  %v1417_v26 = vld [vmem:[%s2591_s4 + $0x20] sm:$0xf]  ;;  %v1545_v2 = vld [vmem:[%s2591_s4 + $0x34] sm:$0xf] }
 0x13f   :  { %v576_v37 = vpop.f32.mrf.mxu2  ;;  %v691_v19 = vunpack.c.h.bf16 %v2282_v29  ;;  %v770_v5 = vmax.f32 %v730_v14, 0.0  ;;  %v733_v60 = vadd.f32 %v693_v39, %v631_v57  ;;  %v1406_v29 = vor.u32 %v1539_v61, %v1403_v36  ;;  %v1433_v30 = vld [vmem:[%s2591_s4 + $0x40] sm:$0xf]  ;;  %v1548_v49 = vld [vmem:[%s2591_s4 + $0x44] sm:$0xf0] }
 0x140   :  { %v776_v8 = vmax.f32 %v736_v45, 0.0  ;;  %945 = vmatpush.bf16.msrb.mxu1 %v798_v52  ;;  %v577_v31 = vadd.f32 %v576_v37, %v2689_v32  ;;  %v799_v25 = vpack.c.bf16 %v741_v54, %v739_v63  ;;  %v775_v10 = vmax.f32 %v735_v21, 0.0  ;;  %v1411_v32 = vld [vmem:[%s2591_s4 + $0x18] sm:$0xf0]  ;;  %v1435_v41 = vld [vmem:[%s2591_s4 + $0x48] sm:$0xf0] }
 0x141   :  { %v814_v13 = vpack.c.bf16 %v772_v44, %v770_v5  ;;  %v731_v48 = vadd.f32 %v691_v19, %v629_v15  ;;  %v773_v1 = vmax.f32 %v733_v60, 0.0  ;;  %v1410_v3 = vor.u32 %v1542_v62, %v1409_v56  ;;  %v1441_v53 = vld [vmem:[%s2591_s4 + $0x50] sm:$0xf]  ;;  %v1550_v45 = vld [vmem:[%s2591_s4 + $0x54] sm:$0xf0] }
 0x142   :  { %v816_v51 = vpack.c.bf16 %v776_v8, %v774_v22  ;;  %v636_v23 = vadd.f32 %v635_v33, %v577_v31  ;;  %1062 = vmatpush.bf16.msrb.mxu0 %v801_v0  ;;  %v1414_v47 = vor.u32 %v1541_v50, %v1411_v32  ;;  %v1418_v34 = vor.u32 %v1544_v59, %v1417_v26  ;;  %v1549_v54 = vld [vmem:[%s2591_s4 + $0x54] sm:$0xf]  ;;  %v1443_v16 = vld [vmem:[%s2591_s4 + $0x58] sm:$0xf0]  ;;  %v1449_v9 = vld [vmem:[%s2591_s4 + $0x60] sm:$0xf] }
 0x143   :  { %946 = vmatmul.bf16.vlgmr.msrb.gmra.mxu1 %v1402_v17  ;;  %v771_v12 = vmax.f32 %v731_v48, 0.0  ;;  %v1422_v6 = vor.u32 %v1543_v38, %v1419_v18  ;;  %v1426_v42 = vor.u32 %v1546_v11, %v1425_v27  ;;  %v1430_v55 = vor.u32 %v1545_v2, %v1427_v20  ;;  %v1551_v22 = vld [vmem:[%s2591_s4 + $0x64] sm:$0xf]  ;;  %v1451_v8 = vld [vmem:[%s2591_s4 + $0x68] sm:$0xf0] }
 0x144   :  { %1003 = vmatpush.bf16.msrb.mxu3 %v816_v51  ;;  %v737_v4 = vadd.f32 %v697_v28, %v636_v23  ;;  %v1434_v52 = vor.u32 %v1548_v49, %v1433_v30  ;;  %v1438_v24 = vor.u32 %v1547_v43, %v1435_v41  ;;  %v1442_v40 = vor.u32 %v1550_v45, %v1441_v53  ;;  %v1457_v0 = vld [vmem:[%s2591_s4 + $0x70] sm:$0xf]  ;;  %v1554_v57 = vld [vmem:[%s2591_s4 + $0x74] sm:$0xf0]  ;;  %v1553_v28 = vld [vmem:[%s2591_s4 + $0x74] sm:$0xf] }
 0x145   :  { %v815_v7 = vpack.c.bf16 %v773_v1, %v771_v12  ;;  %v1446_v35 = vor.u32 %v1549_v54, %v1443_v16  ;;  %v1454_v37 = vor.u32 %v1551_v22, %v1451_v8  ;;  %v1458_v31 = vor.u32 %v1554_v57, %v1457_v0  ;;  %v1459_v39 = vld [vmem:[%s2591_s4 + $0x78] sm:$0xf0]  ;;  %v1465_v33 = vld [vmem:[%s2591_s4 + $0x80] sm:$0xf]  ;;  %v1556_v51 = vld [vmem:[%s2591_s4 + $0x84] sm:$0xf0] }
 0x146   :  { %1063 = vmatpush.bf16.msrb.mxu0 %v799_v25  ;;  %v777_v46 = vmax.f32 %v737_v4, 0.0  ;;  %v1462_v44 = vor.u32 %v1553_v28, %v1459_v39  ;;  %v1466_v63 = vor.u32 %v1556_v51, %v1465_v33  ;;  %v1555_v23 = vld [vmem:[%s2591_s4 + $0x84] sm:$0xf]  ;;  %v1467_v21 = vld [vmem:[%s2591_s4 + $0x88] sm:$0xf0] }
 0x147   :  { %v1470_v19 = vor.u32 %v1555_v23, %v1467_v21  ;;  %v1473_v36 = vld [vmem:[%s2591_s4 + $0x90] sm:$0xf]  ;;  %v1558_v25 = vld [vmem:[%s2591_s4 + $0x94] sm:$0xf0]  ;;  %v1557_v48 = vld [vmem:[%s2591_s4 + $0x94] sm:$0xf] }
 0x148   :  { %1004 = vmatpush.bf16.msrb.mxu3 %v814_v13  ;;  %v817_v58 = vpack.c.bf16 %v777_v46, %v775_v10  ;;  %v1474_v10 = vor.u32 %v1558_v25, %v1473_v36 }
 0x149   :  { %1064 = vmatmul.bf16.vlgmr.msrb.gmra.mxu0 %v1402_v17  ;;  %v1552_v17 = vld [vmem:[%s2591_s4 + $0x64] sm:$0xf0] }
 0x14a   :  { %1121 = vmatpush.bf16.msrb.mxu2 %v817_v58  ;;  %v1450_v14 = vor.u32 %v1552_v17, %v1449_v9 }
 0x14b   :  { %1479 = vmatmul.msk.bf16.vlgmr.msrb.gmra.mxu3 %vm371_vm0, %v1406_v29 }
 0x14e   :  { %1122 = vmatpush.bf16.msrb.mxu2 %v815_v7 }
 0x151   :  { %1489 = vmatmul.msk.bf16.vlgmr.msrb.gmra.mxu2 %vm371_vm0, %v1406_v29  ;;  %v1475_v29 = vld [vmem:[%s2591_s4 + $0x98] sm:$0xf0] }
 0x152   :  { %v1478_v62 = vor.u32 %v1557_v48, %v1475_v29 }
 0x153   :  { %951 = vmatmul.bf16.gmra.mxu1 %v1410_v3 }
 0x159   :  { %1069 = vmatmul.bf16.gmra.mxu0 %v1410_v3 }
 0x15b   :  { %1480 = vmatmul.msk.bf16.gmra.mxu3 %vm371_vm0, %v1414_v47 }
 0x161   :  { %1490 = vmatmul.msk.bf16.gmra.mxu2 %vm371_vm0, %v1414_v47 }
 0x163   :  { %956 = vmatmul.bf16.gmra.mxu1 %v1418_v34 }
 0x169   :  { %1074 = vmatmul.bf16.gmra.mxu0 %v1418_v34 }
 0x16b   :  { %1481 = vmatmul.msk.bf16.gmra.mxu3 %vm371_vm0, %v1422_v6 }
 0x171   :  { %1491 = vmatmul.msk.bf16.gmra.mxu2 %vm371_vm0, %v1422_v6 }
 0x173   :  { %961 = vmatmul.bf16.gmra.mxu1 %v1426_v42 }
 0x179   :  { %1079 = vmatmul.bf16.gmra.mxu0 %v1426_v42 }
 0x17b   :  { %1482 = vmatmul.msk.bf16.gmra.mxu3 %vm371_vm0, %v1430_v55 }
 0x181   :  { %1492 = vmatmul.msk.bf16.gmra.mxu2 %vm371_vm0, %v1430_v55 }
 0x183   :  { %966 = vmatmul.bf16.gmra.mxu1 %v1434_v52 }
 0x189   :  { %1084 = vmatmul.bf16.gmra.mxu0 %v1434_v52 }
 0x18b   :  { %1483 = vmatmul.msk.bf16.gmra.mxu3 %vm371_vm0, %v1438_v24 }
 0x191   :  { %1493 = vmatmul.msk.bf16.gmra.mxu2 %vm371_vm0, %v1438_v24 }
 0x193   :  { %971 = vmatmul.bf16.gmra.mxu1 %v1442_v40 }
 0x199   :  { %1089 = vmatmul.bf16.gmra.mxu0 %v1442_v40 }
 0x19b   :  { %1484 = vmatmul.msk.bf16.gmra.mxu3 %vm371_vm0, %v1446_v35 }
 0x1a1   :  { %1494 = vmatmul.msk.bf16.gmra.mxu2 %vm371_vm0, %v1446_v35 }
 0x1a3   :  { %976 = vmatmul.bf16.gmra.mxu1 %v1450_v14 }
 0x1a9   :  { %1094 = vmatmul.bf16.gmra.mxu0 %v1450_v14 }
 0x1ab   :  { %1485 = vmatmul.msk.bf16.gmra.mxu3 %vm371_vm0, %v1454_v37 }
 0x1b1   :  { %1495 = vmatmul.msk.bf16.gmra.mxu2 %vm371_vm0, %v1454_v37 }
 0x1b3   :  { %981 = vmatmul.bf16.gmra.mxu1 %v1458_v31 }
 0x1b9   :  { %1099 = vmatmul.bf16.gmra.mxu0 %v1458_v31 }
 0x1bb   :  { %1486 = vmatmul.msk.bf16.gmra.mxu3 %vm371_vm0, %v1462_v44 }
 0x1c0   :  { %v947_v15 = vpop.f32.mrf.mxu1 }
 0x1c1   :  { %1496 = vmatmul.msk.bf16.gmra.mxu2 %vm371_vm0, %v1462_v44 }
 0x1c3   :  { %986 = vmatmul.bf16.gmra.mxu1 %v1466_v63 }
 0x1c6   :  { %v1065_v5 = vpop.f32.mrf.mxu0 }
 0x1c8   :  { %v949_v61 = vpop.f32.mrf.mxu1 }
 0x1c9   :  { %1104 = vmatmul.bf16.gmra.mxu0 %v1466_v63 }
 0x1cb   :  { %1487 = vmatmul.msk.bf16.gmra.mxu3 %vm371_vm0, %v1470_v19 }
 0x1ce   :  { %v1006_v4 = vpop.f32.mrf.mxu3  ;;  %v1067_v13 = vpop.f32.mrf.mxu0 }
 0x1cf   :  { %v1007_v60 = vadd.f32 %v1006_v4, %v947_v15 }
 0x1d0   :  { %v952_v46 = vpop.f32.mrf.mxu1 }
 0x1d1   :  { %1174 = vst [vmem:[%s2592_s5] sm:$0xff] %v1007_v60  ;;  %1497 = vmatmul.msk.bf16.gmra.mxu2 %vm371_vm0, %v1470_v19 }
 0x1d3   :  { %991 = vmatmul.bf16.gmra.mxu1 %v1474_v10 }
 0x1d4   :  { %v1124_v58 = vpop.f32.mrf.mxu2 }
 0x1d5   :  { %v1125_v1 = vadd.f32 %v1124_v58, %v1065_v5 }
 0x1d6   :  { %v1008_v12 = vpop.f32.mrf.mxu3  ;;  %v1070_v7 = vpop.f32.mrf.mxu0 }
 0x1d7   :  { %v1009_v56 = vadd.f32 %v1008_v12, %v949_v61  ;;  %1176 = vst.msk [vmem:[%s2592_s5 + $0x8] sm:$0xff] %vm1175_vm1, %v1125_v1 }
 0x1d8   :  { %v954_v3 = vpop.f32.mrf.mxu1 }
 0x1d9   :  { %1177 = vst [vmem:[%s2592_s5 + $0x10] sm:$0xff] %v1009_v56  ;;  %1109 = vmatmul.bf16.gmra.mxu0 %v1474_v10 }
 0x1db   :  { %1488 = vmatmul.msk.bf16.gmra.mxu3 %vm371_vm0, %v1478_v62 }
 0x1dc   :  { %v1126_v50 = vpop.f32.mrf.mxu2 }
 0x1dd   :  { %v1127_v32 = vadd.f32 %v1126_v50, %v1067_v13 }
 0x1de   :  { %v1011_v47 = vpop.f32.mrf.mxu3  ;;  %v1072_v59 = vpop.f32.mrf.mxu0 }
 0x1df   :  { %v1012_v26 = vadd.f32 %v1011_v47, %v952_v46  ;;  %1178 = vst.msk [vmem:[%s2592_s5 + $0x18] sm:$0xff] %vm1175_vm1, %v1127_v32 }
 0x1e0   :  { %v957_v34 = vpop.f32.mrf.mxu1 }
 0x1e1   :  { %1179 = vst [vmem:[%s2592_s5 + $0x20] sm:$0xff] %v1012_v26  ;;  %1498 = vmatmul.msk.bf16.gmra.mxu2 %vm371_vm0, %v1478_v62 }
 0x1e4   :  { %v1129_v38 = vpop.f32.mrf.mxu2 }
 0x1e5   :  { %v1130_v18 = vadd.f32 %v1129_v38, %v1070_v7 }
 0x1e6   :  { %v1013_v6 = vpop.f32.mrf.mxu3  ;;  %v1075_v11 = vpop.f32.mrf.mxu0 }
 0x1e7   :  { %v1014_v27 = vadd.f32 %v1013_v6, %v954_v3  ;;  %1180 = vst.msk [vmem:[%s2592_s5 + $0x28] sm:$0xff] %vm1175_vm1, %v1130_v18 }
 0x1e8   :  { %v959_v42 = vpop.f32.mrf.mxu1 }
 0x1e9   :  { %1181 = vst [vmem:[%s2592_s5 + $0x30] sm:$0xff] %v1014_v27 }
 0x1ec   :  { %v1131_v2 = vpop.f32.mrf.mxu2 }
 0x1ed   :  { %v1132_v20 = vadd.f32 %v1131_v2, %v1072_v59 }
 0x1ee   :  { %v1016_v55 = vpop.f32.mrf.mxu3  ;;  %v1077_v49 = vpop.f32.mrf.mxu0 }
 0x1ef   :  { %v1017_v30 = vadd.f32 %v1016_v55, %v957_v34  ;;  %1182 = vst.msk [vmem:[%s2592_s5 + $0x38] sm:$0xff] %vm1175_vm1, %v1132_v20 }
 0x1f0   :  { %v962_v52 = vpop.f32.mrf.mxu1 }
 0x1f1   :  { %1183 = vst [vmem:[%s2592_s5 + $0x40] sm:$0xff] %v1017_v30 }
 0x1f4   :  { %v1134_v43 = vpop.f32.mrf.mxu2 }
 0x1f5   :  { %v1135_v41 = vadd.f32 %v1134_v43, %v1075_v11 }
 0x1f6   :  { %v1018_v24 = vpop.f32.mrf.mxu3  ;;  %v1080_v45 = vpop.f32.mrf.mxu0 }
 0x1f7   :  { %v1019_v53 = vadd.f32 %v1018_v24, %v959_v42  ;;  %1184 = vst.msk [vmem:[%s2592_s5 + $0x48] sm:$0xff] %vm1175_vm1, %v1135_v41 }
 0x1f8   :  { %v964_v40 = vpop.f32.mrf.mxu1 }
 0x1f9   :  { %1185 = vst [vmem:[%s2592_s5 + $0x50] sm:$0xff] %v1019_v53 }
 0x1fc   :  { %v1136_v54 = vpop.f32.mrf.mxu2 }
 0x1fd   :  { %v1137_v16 = vadd.f32 %v1136_v54, %v1077_v49 }
 0x1fe   :  { %v1021_v35 = vpop.f32.mrf.mxu3  ;;  %v1082_v17 = vpop.f32.mrf.mxu0 }
 0x1ff   :  { %v1022_v9 = vadd.f32 %v1021_v35, %v962_v52  ;;  %1186 = vst.msk [vmem:[%s2592_s5 + $0x58] sm:$0xff] %vm1175_vm1, %v1137_v16 }
 0x200   :  { %v967_v14 = vpop.f32.mrf.mxu1 }
 0x201   :  { %1187 = vst [vmem:[%s2592_s5 + $0x60] sm:$0xff] %v1022_v9 }
 0x204   :  { %v1139_v22 = vpop.f32.mrf.mxu2 }
 0x205   :  { %v1140_v8 = vadd.f32 %v1139_v22, %v1080_v45 }
 0x206   :  { %v1023_v37 = vpop.f32.mrf.mxu3  ;;  %v1085_v57 = vpop.f32.mrf.mxu0 }
 0x207   :  { %v1024_v0 = vadd.f32 %v1023_v37, %v964_v40  ;;  %1188 = vst.msk [vmem:[%s2592_s5 + $0x68] sm:$0xff] %vm1175_vm1, %v1140_v8 }
 0x208   :  { %v969_v31 = vpop.f32.mrf.mxu1 }
 0x209   :  { %1189 = vst [vmem:[%s2592_s5 + $0x70] sm:$0xff] %v1024_v0 }
 0x20c   :  { %v1141_v28 = vpop.f32.mrf.mxu2 }
 0x20d   :  { %v1142_v39 = vadd.f32 %v1141_v28, %v1082_v17 }
 0x20e   :  { %v1026_v44 = vpop.f32.mrf.mxu3  ;;  %v1087_v51 = vpop.f32.mrf.mxu0 }
 0x20f   :  { %v1027_v33 = vadd.f32 %v1026_v44, %v967_v14  ;;  %1190 = vst.msk [vmem:[%s2592_s5 + $0x78] sm:$0xff] %vm1175_vm1, %v1142_v39 }
 0x210   :  { %v972_v63 = vpop.f32.mrf.mxu1 }
 0x211   :  { %1191 = vst [vmem:[%s2592_s5 + $0x80] sm:$0xff] %v1027_v33 }
 0x214   :  { %v1144_v15 = vpop.f32.mrf.mxu2 }
 0x215   :  { %v1145_v23 = vadd.f32 %v1144_v15, %v1085_v57 }
 0x216   :  { %v1028_v21 = vpop.f32.mrf.mxu3  ;;  %v1090_v5 = vpop.f32.mrf.mxu0 }
 0x217   :  { %v1029_v19 = vadd.f32 %v1028_v21, %v969_v31  ;;  %1192 = vst.msk [vmem:[%s2592_s5 + $0x88] sm:$0xff] %vm1175_vm1, %v1145_v23 }
 0x218   :  { %v974_v61 = vpop.f32.mrf.mxu1 }
 0x219   :  { %1193 = vst [vmem:[%s2592_s5 + $0x90] sm:$0xff] %v1029_v19 }
 0x21c   :  { %v1146_v36 = vpop.f32.mrf.mxu2 }
 0x21d   :  { %v1147_v25 = vadd.f32 %v1146_v36, %v1087_v51 }
 0x21e   :  { %v1031_v4 = vpop.f32.mrf.mxu3  ;;  %v1092_v13 = vpop.f32.mrf.mxu0 }
 0x21f   :  { %v1032_v60 = vadd.f32 %v1031_v4, %v972_v63  ;;  %1194 = vst.msk [vmem:[%s2592_s5 + $0x98] sm:$0xff] %vm1175_vm1, %v1147_v25 }
 0x220   :  { %v977_v10 = vpop.f32.mrf.mxu1 }
 0x221   :  { %1195 = vst [vmem:[%s2592_s5 + $0xa0] sm:$0xff] %v1032_v60 }
 0x224   :  { %v1149_v46 = vpop.f32.mrf.mxu2 }
 0x225   :  { %v1150_v48 = vadd.f32 %v1149_v46, %v1090_v5 }
 0x226   :  { %v1033_v29 = vpop.f32.mrf.mxu3  ;;  %v1095_v1 = vpop.f32.mrf.mxu0 }
 0x227   :  { %v1034_v58 = vadd.f32 %v1033_v29, %v974_v61  ;;  %1196 = vst.msk [vmem:[%s2592_s5 + $0xa8] sm:$0xff] %vm1175_vm1, %v1150_v48 }
 0x228   :  { %v979_v12 = vpop.f32.mrf.mxu1 }
 0x229   :  { %1197 = vst [vmem:[%s2592_s5 + $0xb0] sm:$0xff] %v1034_v58 }
 0x22c   :  { %v1151_v56 = vpop.f32.mrf.mxu2 }
 0x22d   :  { %v1152_v62 = vadd.f32 %v1151_v56, %v1092_v13 }
 0x22e   :  { %v1036_v7 = vpop.f32.mrf.mxu3  ;;  %v1097_v50 = vpop.f32.mrf.mxu0 }
 0x22f   :  { %v1037_v3 = vadd.f32 %v1036_v7, %v977_v10  ;;  %1198 = vst.msk [vmem:[%s2592_s5 + $0xb8] sm:$0xff] %vm1175_vm1, %v1152_v62 }
 0x230   :  { %v982_v32 = vpop.f32.mrf.mxu1 }
 0x231   :  { %1199 = vst [vmem:[%s2592_s5 + $0xc0] sm:$0xff] %v1037_v3 }
 0x234   :  { %v1154_v47 = vpop.f32.mrf.mxu2 }
 0x235   :  { %v1155_v26 = vadd.f32 %v1154_v47, %v1095_v1 }
 0x236   :  { %v1038_v59 = vpop.f32.mrf.mxu3  ;;  %v1100_v38 = vpop.f32.mrf.mxu0 }
 0x237   :  { %v1039_v34 = vadd.f32 %v1038_v59, %v979_v12  ;;  %1200 = vst.msk [vmem:[%s2592_s5 + $0xc8] sm:$0xff] %vm1175_vm1, %v1155_v26 }
 0x238   :  { %v984_v11 = vpop.f32.mrf.mxu1 }
 0x239   :  { %1201 = vst [vmem:[%s2592_s5 + $0xd0] sm:$0xff] %v1039_v34 }
 0x23c   :  { %v1156_v18 = vpop.f32.mrf.mxu2 }
 0x23d   :  { %v1157_v6 = vadd.f32 %v1156_v18, %v1097_v50 }
 0x23e   :  { %v1041_v27 = vpop.f32.mrf.mxu3  ;;  %v1102_v20 = vpop.f32.mrf.mxu0 }
 0x23f   :  { %v1042_v42 = vadd.f32 %v1041_v27, %v982_v32  ;;  %1202 = vst.msk [vmem:[%s2592_s5 + $0xd8] sm:$0xff] %vm1175_vm1, %v1157_v6 }
 0x240   :  { %v987_v52 = vpop.f32.mrf.mxu1 }
 0x241   :  { %1203 = vst [vmem:[%s2592_s5 + $0xe0] sm:$0xff] %v1042_v42 }
 0x244   :  { %v1159_v2 = vpop.f32.mrf.mxu2 }
 0x245   :  { %v1160_v55 = vadd.f32 %v1159_v2, %v1100_v38 }
 0x246   :  { %v1043_v30 = vpop.f32.mrf.mxu3  ;;  %v1105_v45 = vpop.f32.mrf.mxu0 }
 0x247   :  { %v1044_v49 = vadd.f32 %v1043_v30, %v984_v11  ;;  %1204 = vst.msk [vmem:[%s2592_s5 + $0xe8] sm:$0xff] %vm1175_vm1, %v1160_v55 }
 0x248   :  { %v989_v40 = vpop.f32.mrf.mxu1 }
 0x249   :  { %1205 = vst [vmem:[%s2592_s5 + $0xf0] sm:$0xff] %v1044_v49 }
 0x24c   :  { %v1161_v43 = vpop.f32.mrf.mxu2 }
 0x24d   :  { %v1162_v41 = vadd.f32 %v1161_v43, %v1102_v20 }
 0x24e   :  { %v1046_v24 = vpop.f32.mrf.mxu3  ;;  %v1107_v17 = vpop.f32.mrf.mxu0 }
 0x24f   :  { %v1047_v53 = vadd.f32 %v1046_v24, %v987_v52  ;;  %1206 = vst.msk [vmem:[%s2592_s5 + $0xf8] sm:$0xff] %vm1175_vm1, %v1162_v41 }
 0x250   :  { %v992_v14 = vpop.f32.mrf.mxu1 }
 0x251   :  { %1207 = vst [vmem:[%s2592_s5 + $0x100] sm:$0xff] %v1047_v53 }
 0x254   :  { %v1164_v54 = vpop.f32.mrf.mxu2 }
 0x255   :  { %v1165_v16 = vadd.f32 %v1164_v54, %v1105_v45 }
 0x256   :  { %v1048_v35 = vpop.f32.mrf.mxu3  ;;  %v1110_v57 = vpop.f32.mrf.mxu0 }
 0x257   :  { %v1049_v9 = vadd.f32 %v1048_v35, %v989_v40  ;;  %1208 = vst.msk [vmem:[%s2592_s5 + $0x108] sm:$0xff] %vm1175_vm1, %v1165_v16 }
 0x258   :  { %v994_v39 = vpop.f32.mrf.mxu1 }
 0x259   :  { %1209 = vst [vmem:[%s2592_s5 + $0x110] sm:$0xff] %v1049_v9 }
 0x25c   :  { %v1166_v22 = vpop.f32.mrf.mxu2 }
 0x25d   :  { %v1167_v8 = vadd.f32 %v1166_v22, %v1107_v17 }
 0x25e   :  { %v1051_v37 = vpop.f32.mrf.mxu3  ;;  %v1112_v51 = vpop.f32.mrf.mxu0 }
 0x25f   :  { %v1052_v0 = vadd.f32 %v1051_v37, %v992_v14  ;;  %1210 = vst.msk [vmem:[%s2592_s5 + $0x118] sm:$0xff] %vm1175_vm1, %v1167_v8 }
 0x261   :  { %1211 = vst [vmem:[%s2592_s5 + $0x120] sm:$0xff] %v1052_v0 }
 0x264   :  { %v1169_v31 = vpop.f32.mrf.mxu2 }
 0x265   :  { %v1170_v28 = vadd.f32 %v1169_v31, %v1110_v57 }
 0x266   :  { %v1053_v44 = vpop.f32.mrf.mxu3 }
 0x267   :  { %v1054_v33 = vadd.f32 %v1053_v44, %v994_v39  ;;  %1212 = vst.msk [vmem:[%s2592_s5 + $0x128] sm:$0xff] %vm1175_vm1, %v1170_v28 }
 0x269   :  { %1213 = vst [vmem:[%s2592_s5 + $0x130] sm:$0xff] %v1054_v33 }
 0x26c   :  { %v1171_v63 = vpop.f32.mrf.mxu2 }
 0x26d   :  { %v1172_v15 = vadd.f32 %v1171_v63, %v1112_v51 }
 0x26f   :  { %1214 = vst.msk [vmem:[%s2592_s5 + $0x138] sm:$0xff] %vm1175_vm1, %v1172_v15 }

</bundles_post_ra>
